<compile_context>
chip_gen: v7x
topology: tpu7x:2x2x1
jax: 0.10.0
libtpu: 0.0.40
codegen_flags: <defaults>
</compile_context>

<pallas_src>
import functools

import jax
import jax.numpy as jnp
from jax.experimental import pallas as pl
from jax.experimental.pallas import tpu as pltpu

KH = KW = 3  # 3x3 kernel, stride 1, no padding


def _conv_kernel(x_ref, w_ref, b_ref, o_ref, *, width, hw):
    # x_ref: (N*Cin, H*W)           flattened spatial slab (lane-dense, 256 lanes)
    # w_ref: (KH*KW, N*Cout, N*Cin) tap-major, batch-block-diagonal weights
    # b_ref: (N*Cout, 1)
    # o_ref: (N*Cout, H*W)          full spatial frame; wrapper crops to Hout x Wout
    x = x_ref[...]

    # Bias folded into the accumulator init (single hoisted broadcast).
    acc = jnp.broadcast_to(b_ref[...], o_ref.shape).astype(jnp.float32)

    for t in range(KH * KW):  # 9 taps, static unrolled
        kh, kw = divmod(t, KW)
        off = kh * width + kw
        # Align tap (kh, kw) onto the output frame: xt[:, p] = x[:, p + off].
        # Lanes that wrap only affect output rows/cols >= Hout/Wout, which the
        # wrapper slices off, so no masking is needed.
        xt = x if off == 0 else pltpu.roll(x, hw - off, axis=1)
        # One block-diagonal MXU push covers every batch at once.
        acc = acc + jnp.dot(w_ref[t], xt, preferred_element_type=jnp.float32)

    o_ref[...] = acc.astype(o_ref.dtype)


def conv2d_pallas(x2d, w_bd, b_col, width, out_dtype):
    rows, hw = x2d.shape            # (N*Cin, H*W)
    n_taps, mrows, _ = w_bd.shape   # (KH*KW, N*Cout, N*Cin)
    itemsize = jnp.dtype(out_dtype).itemsize
    flops = 2 * n_taps * mrows * rows * hw
    bytes_accessed = itemsize * (x2d.size + w_bd.size + b_col.size + mrows * hw)

    kernel = functools.partial(_conv_kernel, width=width, hw=hw)
    return pl.pallas_call(
        kernel,
        out_shape=jax.ShapeDtypeStruct((mrows, hw), out_dtype),
        in_specs=[
            pl.BlockSpec(memory_space=pltpu.MemorySpace.VMEM),
            pl.BlockSpec(memory_space=pltpu.MemorySpace.VMEM),
            pl.BlockSpec(memory_space=pltpu.MemorySpace.VMEM),
        ],
        out_specs=pl.BlockSpec(memory_space=pltpu.MemorySpace.VMEM),
        cost_estimate=pl.CostEstimate(
            flops=flops, transcendentals=0, bytes_accessed=bytes_accessed
        ),
    )(x2d, w_bd, b_col)


@jax.jit
def dummy_module_forward(x_nchw, w_oihw, bias):
    # x_nchw: (N, Cin, H, W); w_oihw: (Cout, Cin, KH, KW); bias: (Cout,)
    N, Cin, H, W = x_nchw.shape
    Cout = w_oihw.shape[0]
    Hout, Wout = H - KH + 1, W - KW + 1

    # FREE bitcast reshape — no data movement, no extra dispatch on x.
    x2d = x_nchw.reshape(N * Cin, H * W)

    # Tap-major weights, block-diagonal over batch so all batches share a
    # single MXU contraction per tap.  Weight-sized (tiny) prep only.
    w_tap = jnp.transpose(w_oihw, (2, 3, 0, 1)).reshape(KH * KW, Cout, Cin)
    eye = jnp.eye(N, dtype=w_tap.dtype)
    w_bd = jnp.einsum("nm,toc->tnomc", eye, w_tap).reshape(
        KH * KW, N * Cout, N * Cin
    )
    b_col = jnp.tile(bias, N).reshape(N * Cout, 1)

    out2d = conv2d_pallas(x2d, w_bd, b_col, W, x_nchw.dtype)  # (N*Cout, H*W)

    # Free reshape back to the full spatial frame, then crop the valid window
    # (the cropped lanes are the only ones holding roll-wrapped garbage).
    return out2d.reshape(N, Cout, H, W)[:, :, :Hout, :Wout]


if __name__ == "__main__":
    key = jax.random.PRNGKey(0)
    kx, kw, kb = jax.random.split(key, 3)

    N, Cin, H, W = 2, 3, 16, 16
    Cout = 42

    x = jax.random.normal(kx, (N, Cin, H, W), dtype=jnp.float32)
    weight = jax.random.normal(kw, (Cout, Cin, KH, KW), dtype=jnp.float32) * 0.1
    bias = jax.random.normal(kb, (Cout,), dtype=jnp.float32) * 0.1

    out = dummy_module_forward(x, weight, bias)
    out = jax.block_until_ready(out)

    # Cross-check against XLA's conv (matches PyTorch Conv2d semantics).
    ref = jax.lax.conv_general_dilated(
        x, weight, window_strides=(1, 1), padding="VALID",
        dimension_numbers=("NCHW", "OIHW", "NCHW"),
    ) + bias[None, :, None, None]
    assert out.shape == (N, Cout, H - 2, W - 2), out.shape
    assert jnp.allclose(out, ref, atol=1e-4, rtol=1e-4)

    print("KERNEL_OK")
</pallas_src>

<mosaic_0001>
module attributes {stable_mosaic.version = 11 : i64} {
  func.func @_conv_kernel(%arg0: memref<6x256xf32, #tpu.memory_space<vmem>>, %arg1: memref<9x84x6xf32, #tpu.memory_space<vmem>>, %arg2: memref<84x1xf32, #tpu.memory_space<vmem>>, %arg3: memref<84x256xf32, #tpu.memory_space<vmem>>) attributes {dimension_semantics = [], scalar_prefetch = 0 : i64, scratch_operands = 0 : i64, tpu.core_type = #tpu.core_type<tc>} {
    %c0 = arith.constant 0 : index
    %c0_0 = arith.constant 0 : index
    %0 = vector.load %arg0[%c0, %c0_0] : memref<6x256xf32, #tpu.memory_space<vmem>>, vector<6x256xf32>
    %c0_1 = arith.constant 0 : index
    %c0_2 = arith.constant 0 : index
    %1 = vector.load %arg2[%c0_1, %c0_2] : memref<84x1xf32, #tpu.memory_space<vmem>>, vector<84x1xf32>
    %2 = vector.shape_cast %1 : vector<84x1xf32> to vector<84x1xf32>
    %3 = vector.broadcast %2 : vector<84x1xf32> to vector<84x256xf32>
    %c0_3 = arith.constant 0 : index
    %c0_4 = arith.constant 0 : index
    %c0_5 = arith.constant 0 : index
    %4 = vector.load %arg1[%c0_3, %c0_4, %c0_5] : memref<9x84x6xf32, #tpu.memory_space<vmem>>, vector<1x84x6xf32>
    %5 = vector.shape_cast %4 : vector<1x84x6xf32> to vector<84x6xf32>
    %cst = arith.constant dense<0.000000e+00> : vector<84x256xf32>
    %6 = tpu.matmul %5, %0, %cst {dimension_numbers = #tpu.dot_dimension_numbers<[1], [0], [0], [1], [0, 0, 1, 1], [], []>} : vector<84x6xf32>, vector<6x256xf32>, vector<84x256xf32> -> vector<84x256xf32>
    %7 = arith.addf %3, %6 : vector<84x256xf32>
    %c255_i32 = arith.constant 255 : i32
    %8 = tpu.dynamic_rotate %0 by %c255_i32 dim 1 : vector<6x256xf32>, i32 -> vector<6x256xf32>
    %c1 = arith.constant 1 : index
    %c0_6 = arith.constant 0 : index
    %c0_7 = arith.constant 0 : index
    %9 = vector.load %arg1[%c1, %c0_6, %c0_7] : memref<9x84x6xf32, #tpu.memory_space<vmem>>, vector<1x84x6xf32>
    %10 = vector.shape_cast %9 : vector<1x84x6xf32> to vector<84x6xf32>
    %cst_8 = arith.constant dense<0.000000e+00> : vector<84x256xf32>
    %11 = tpu.matmul %10, %8, %cst_8 {dimension_numbers = #tpu.dot_dimension_numbers<[1], [0], [0], [1], [0, 0, 1, 1], [], []>} : vector<84x6xf32>, vector<6x256xf32>, vector<84x256xf32> -> vector<84x256xf32>
    %12 = arith.addf %7, %11 : vector<84x256xf32>
    %c254_i32 = arith.constant 254 : i32
    %13 = tpu.dynamic_rotate %0 by %c254_i32 dim 1 : vector<6x256xf32>, i32 -> vector<6x256xf32>
    %c2 = arith.constant 2 : index
    %c0_9 = arith.constant 0 : index
    %c0_10 = arith.constant 0 : index
    %14 = vector.load %arg1[%c2, %c0_9, %c0_10] : memref<9x84x6xf32, #tpu.memory_space<vmem>>, vector<1x84x6xf32>
    %15 = vector.shape_cast %14 : vector<1x84x6xf32> to vector<84x6xf32>
    %cst_11 = arith.constant dense<0.000000e+00> : vector<84x256xf32>
    %16 = tpu.matmul %15, %13, %cst_11 {dimension_numbers = #tpu.dot_dimension_numbers<[1], [0], [0], [1], [0, 0, 1, 1], [], []>} : vector<84x6xf32>, vector<6x256xf32>, vector<84x256xf32> -> vector<84x256xf32>
    %17 = arith.addf %12, %16 : vector<84x256xf32>
    %c240_i32 = arith.constant 240 : i32
    %18 = tpu.dynamic_rotate %0 by %c240_i32 dim 1 : vector<6x256xf32>, i32 -> vector<6x256xf32>
    %c3 = arith.constant 3 : index
    %c0_12 = arith.constant 0 : index
    %c0_13 = arith.constant 0 : index
    %19 = vector.load %arg1[%c3, %c0_12, %c0_13] : memref<9x84x6xf32, #tpu.memory_space<vmem>>, vector<1x84x6xf32>
    %20 = vector.shape_cast %19 : vector<1x84x6xf32> to vector<84x6xf32>
    %cst_14 = arith.constant dense<0.000000e+00> : vector<84x256xf32>
    %21 = tpu.matmul %20, %18, %cst_14 {dimension_numbers = #tpu.dot_dimension_numbers<[1], [0], [0], [1], [0, 0, 1, 1], [], []>} : vector<84x6xf32>, vector<6x256xf32>, vector<84x256xf32> -> vector<84x256xf32>
    %22 = arith.addf %17, %21 : vector<84x256xf32>
    %c239_i32 = arith.constant 239 : i32
    %23 = tpu.dynamic_rotate %0 by %c239_i32 dim 1 : vector<6x256xf32>, i32 -> vector<6x256xf32>
    %c4 = arith.constant 4 : index
    %c0_15 = arith.constant 0 : index
    %c0_16 = arith.constant 0 : index
    %24 = vector.load %arg1[%c4, %c0_15, %c0_16] : memref<9x84x6xf32, #tpu.memory_space<vmem>>, vector<1x84x6xf32>
    %25 = vector.shape_cast %24 : vector<1x84x6xf32> to vector<84x6xf32>
    %cst_17 = arith.constant dense<0.000000e+00> : vector<84x256xf32>
    %26 = tpu.matmul %25, %23, %cst_17 {dimension_numbers = #tpu.dot_dimension_numbers<[1], [0], [0], [1], [0, 0, 1, 1], [], []>} : vector<84x6xf32>, vector<6x256xf32>, vector<84x256xf32> -> vector<84x256xf32>
    %27 = arith.addf %22, %26 : vector<84x256xf32>
    %c238_i32 = arith.constant 238 : i32
    %28 = tpu.dynamic_rotate %0 by %c238_i32 dim 1 : vector<6x256xf32>, i32 -> vector<6x256xf32>
    %c5 = arith.constant 5 : index
    %c0_18 = arith.constant 0 : index
    %c0_19 = arith.constant 0 : index
    %29 = vector.load %arg1[%c5, %c0_18, %c0_19] : memref<9x84x6xf32, #tpu.memory_space<vmem>>, vector<1x84x6xf32>
    %30 = vector.shape_cast %29 : vector<1x84x6xf32> to vector<84x6xf32>
    %cst_20 = arith.constant dense<0.000000e+00> : vector<84x256xf32>
    %31 = tpu.matmul %30, %28, %cst_20 {dimension_numbers = #tpu.dot_dimension_numbers<[1], [0], [0], [1], [0, 0, 1, 1], [], []>} : vector<84x6xf32>, vector<6x256xf32>, vector<84x256xf32> -> vector<84x256xf32>
    %32 = arith.addf %27, %31 : vector<84x256xf32>
    %c224_i32 = arith.constant 224 : i32
    %33 = tpu.dynamic_rotate %0 by %c224_i32 dim 1 : vector<6x256xf32>, i32 -> vector<6x256xf32>
    %c6 = arith.constant 6 : index
    %c0_21 = arith.constant 0 : index
    %c0_22 = arith.constant 0 : index
    %34 = vector.load %arg1[%c6, %c0_21, %c0_22] : memref<9x84x6xf32, #tpu.memory_space<vmem>>, vector<1x84x6xf32>
    %35 = vector.shape_cast %34 : vector<1x84x6xf32> to vector<84x6xf32>
    %cst_23 = arith.constant dense<0.000000e+00> : vector<84x256xf32>
    %36 = tpu.matmul %35, %33, %cst_23 {dimension_numbers = #tpu.dot_dimension_numbers<[1], [0], [0], [1], [0, 0, 1, 1], [], []>} : vector<84x6xf32>, vector<6x256xf32>, vector<84x256xf32> -> vector<84x256xf32>
    %37 = arith.addf %32, %36 : vector<84x256xf32>
    %c223_i32 = arith.constant 223 : i32
    %38 = tpu.dynamic_rotate %0 by %c223_i32 dim 1 : vector<6x256xf32>, i32 -> vector<6x256xf32>
    %c7 = arith.constant 7 : index
    %c0_24 = arith.constant 0 : index
    %c0_25 = arith.constant 0 : index
    %39 = vector.load %arg1[%c7, %c0_24, %c0_25] : memref<9x84x6xf32, #tpu.memory_space<vmem>>, vector<1x84x6xf32>
    %40 = vector.shape_cast %39 : vector<1x84x6xf32> to vector<84x6xf32>
    %cst_26 = arith.constant dense<0.000000e+00> : vector<84x256xf32>
    %41 = tpu.matmul %40, %38, %cst_26 {dimension_numbers = #tpu.dot_dimension_numbers<[1], [0], [0], [1], [0, 0, 1, 1], [], []>} : vector<84x6xf32>, vector<6x256xf32>, vector<84x256xf32> -> vector<84x256xf32>
    %42 = arith.addf %37, %41 : vector<84x256xf32>
    %c222_i32 = arith.constant 222 : i32
    %43 = tpu.dynamic_rotate %0 by %c222_i32 dim 1 : vector<6x256xf32>, i32 -> vector<6x256xf32>
    %c8 = arith.constant 8 : index
    %c0_27 = arith.constant 0 : index
    %c0_28 = arith.constant 0 : index
    %44 = vector.load %arg1[%c8, %c0_27, %c0_28] : memref<9x84x6xf32, #tpu.memory_space<vmem>>, vector<1x84x6xf32>
    %45 = vector.shape_cast %44 : vector<1x84x6xf32> to vector<84x6xf32>
    %cst_29 = arith.constant dense<0.000000e+00> : vector<84x256xf32>
    %46 = tpu.matmul %45, %43, %cst_29 {dimension_numbers = #tpu.dot_dimension_numbers<[1], [0], [0], [1], [0, 0, 1, 1], [], []>} : vector<84x6xf32>, vector<6x256xf32>, vector<84x256xf32> -> vector<84x256xf32>
    %47 = arith.addf %42, %46 : vector<84x256xf32>
    %c0_30 = arith.constant 0 : index
    %c0_31 = arith.constant 0 : index
    %48 = vector.load %arg3[%c0_30, %c0_31] : memref<84x256xf32, #tpu.memory_space<vmem>>, vector<84x256xf32>
    tpu.vector_store %arg3[%c0_30, %c0_31], %47 {strides = array<i32>} : memref<84x256xf32, #tpu.memory_space<vmem>>, vector<84x256xf32>,
    return
  }
}

</mosaic_0001>

<bundles_post_ra>
// kernel: tile.8
= control target key start
LH: loop header
LB: loop body
LE: loop exit
PB: predicated region body
PF: predicated region fallthrough
CT: control target
= control target key end

     0   :  { %s22_s0 = inlined_call_operand.vmem [shape: f32[42], index: 0, kind: input, shape index: {}]   ;;  %s23_s1 = inlined_call_operand.vmem [shape: f32[2,42], index: 1, kind: output, shape index: {}]  }
   0x1   :  { %v4_v0 = vld [vmem:[%s22_s0] ss:$0 sm:$0xff] }
   0x2   :  { %5 = vst [vmem:[%s23_s1] sm:$0x3] %v4_v0 }

// kernel: tile.0
= control target key start
LH: loop header
LB: loop body
LE: loop exit
PB: predicated region body
PF: predicated region fallthrough
CT: control target
= control target key end

     0   :  { %s358_s8 = smov 125   ;;  %s359_s9 = smov 126   ;;  %vm7_vm0 = vcmask 7168   ;;  %s579_s0 = inlined_call_operand.vmem [shape: f32[2,42], index: 0, kind: input, shape index: {}]   ;;  %s580_s1 = inlined_call_operand.vmem [shape: f32[84,1], index: 1, kind: output, shape index: {}]  }
   0x1   :  { %v4_v0 = vld [vmem:[%s579_s0] sm:$0x3]  ;;  %s357_s0 = smov 127   ;;  %s360_s10 = smov 124  }
   0x2   :  { %5 = vst [vmem:[#allocation0] sm:$0x3] %v4_v0  ;;  %s361_s11 = smov 123   ;;  %s362_s12 = smov 122  }
   0x3   :  { %s363_s13 = smov 121   ;;  %s364_s14 = smov 120  }
   0x4   :  { %s365_s15 = smov 119   ;;  %s366_s16 = smov 118  }
   0x5   :  { %s367_s17 = smov 117   ;;  %s368_s18 = smov 116  }
   0x6   :  { %s369_s19 = smov 115   ;;  %s370_s20 = smov 114  }
   0x7   :  { %s371_s21 = smov 113   ;;  %s372_s22 = smov 112  }
   0x8   :  { %s373_s23 = smov 111   ;;  %s374_s24 = smov 110  }
   0x9   :  { %v9_v1 = vld [vmem:[#allocation0] sm:$0x3]   ;;  %s136_s25 = smov 3  ;;  %s375_s26 = smov 109  }
   0xa   :  { %v21_v2 = vld [vmem:[#allocation0] sm:$0x3]   ;;  %10 = vrot.lane.b32.xlu0 %v9_v1, %s357_s0  ;;  %s376_s27 = smov 108   ;;  %s144_s28 = smov 3 }
   0xb   :  { %22 = vrot.lane.b32.xlu1 %v21_v2, %s358_s8  ;;  %v15_v3 = vld [vmem:[#allocation0] sm:$0x3]   ;;  %s152_s29 = smov 3  ;;  %s377_s30 = smov 107  }
   0xc   :  { %v27_v4 = vld [vmem:[#allocation0] sm:$0x3]   ;;  %s378_s2 = smov 106   ;;  %s160_s3 = smov 3 }
   0xd   :  { %v33_v5 = vld [vmem:[#allocation0] sm:$0x3]   ;;  %s168_s4 = smov 3  ;;  %s379_s5 = smov 105  }
   0xe   :  { %16 = vrot.lane.b32.xlu0 %v15_v3, %s359_s9  ;;  %v39_v6 = vld [vmem:[#allocation0] sm:$0x3]   ;;  %s380_s6 = smov 104   ;;  %s176_s7 = smov 3 }
   0xf   :  { %28 = vrot.lane.b32.xlu1 %v27_v4, %s360_s10  ;;  %v45_v7 = vld [vmem:[#allocation0] sm:$0x3]   ;;  %s184_s0 = smov 3  ;;  %s381_s8 = smov 103  }
  0x10   :  { %v51_v8 = vld [vmem:[#allocation0] sm:$0x3]   ;;  %s382_s9 = smov 102   ;;  %s192_s10 = smov 3 }
  0x11   :  { %v57_v9 = vld [vmem:[#allocation0] sm:$0x3]  }
  0x12   :  { %34 = vrot.lane.b32.xlu0 %v33_v5, %s361_s11  ;;  %v63_v10 = vld [vmem:[#allocation0] sm:$0x3]   ;;  %s200_s11 = smov 3 }
  0x13   :  { %40 = vrot.lane.b32.xlu1 %v39_v6, %s362_s12  ;;  %v69_v11 = vld [vmem:[#allocation0] sm:$0x3]   ;;  %s383_s12 = smov 101  }
  0x14   :  { %v75_v12 = vld [vmem:[#allocation0] sm:$0x3]  }
  0x15   :  { %v81_v13 = vld [vmem:[#allocation0] sm:$0x3]  }
  0x16   :  { %46 = vrot.lane.b32.xlu0 %v45_v7, %s363_s13  ;;  %v87_v14 = vld [vmem:[#allocation0] sm:$0x3]   ;;  %s384_s13 = smov 100  }
  0x17   :  { %52 = vrot.lane.b32.xlu1 %v51_v8, %s364_s14  ;;  %v93_v15 = vld [vmem:[#allocation0] sm:$0x3]   ;;  %s208_s14 = smov 3 }
  0x18   :  { %v99_v16 = vld [vmem:[#allocation0] sm:$0x3]  }
  0x19   :  { %v105_v17 = vld [vmem:[#allocation0] sm:$0x3]  }
  0x1a   :  { %58 = vrot.lane.b32.xlu0 %v57_v9, %s365_s15  ;;  %v111_v18 = vld [vmem:[#allocation0] sm:$0x3]   ;;  %s385_s15 = smov 99  }
  0x1b   :  { %64 = vrot.lane.b32.xlu1 %v63_v10, %s366_s16  ;;  %v117_v19 = vld [vmem:[#allocation0] sm:$0x3]   ;;  %s386_s16 = smov 98  }
  0x1c   :  { %v123_v20 = vld [vmem:[#allocation0] sm:$0x3]  }
  0x1d   :  { %v129_v21 = vld [vmem:[#allocation0] sm:$0x3]  }
  0x1e   :  { %70 = vrot.lane.b32.xlu0 %v69_v11, %s367_s17  ;;  %v137_v22 = vld [vmem:[#allocation0 + $0x1] ss:$-1 sm:%s136_s25]   ;;  %s387_s17 = smov 97   ;;  %s393_s25 = smov 91  }
  0x1f   :  { %76 = vrot.lane.b32.xlu1 %v75_v12, %s368_s18  ;;  %v145_v23 = vld [vmem:[#allocation0 + $0x1] ss:$-1 sm:%s144_s28]   ;;  %s388_s18 = smov 96   ;;  %s396_s28 = smov 88  }
  0x20   :  { %v153_v24 = vld [vmem:[#allocation0 + $0x1] ss:$-1 sm:%s152_s29]   ;;  %s397_s29 = smov 87  }
  0x21   :  { %v161_v25 = vld [vmem:[#allocation0 + $0x1] ss:$-1 sm:%s160_s3]  }
  0x22   :  { %82 = vrot.lane.b32.xlu0 %v81_v13, %s369_s19  ;;  %v169_v26 = vld [vmem:[#allocation0 + $0x1] ss:$-1 sm:%s168_s4]   ;;  %s389_s19 = smov 95  }
  0x23   :  { %88 = vrot.lane.b32.xlu1 %v87_v14, %s370_s20  ;;  %v177_v27 = vld [vmem:[#allocation0 + $0x1] ss:$-1 sm:%s176_s7]   ;;  %s390_s20 = smov 94  }
  0x24   :  { %v185_v28 = vld [vmem:[#allocation0 + $0x1] ss:$-1 sm:%s184_s0]  }
  0x25   :  { %v193_v29 = vld [vmem:[#allocation0 + $0x1] ss:$-1 sm:%s192_s10]  }
  0x26   :  { %94 = vrot.lane.b32.xlu0 %v93_v15, %s371_s21  ;;  %v201_v30 = vld [vmem:[#allocation0 + $0x1] ss:$-1 sm:%s200_s11]  }
  0x27   :  { %100 = vrot.lane.b32.xlu1 %v99_v16, %s372_s22  ;;  %v209_v31 = vld [vmem:[#allocation0 + $0x1] ss:$-1 sm:%s208_s14]  }
  0x28   :  { %v215_v32 = vld [vmem:[#allocation0] sm:$0x3]  }
  0x29   :  { %v221_v33 = vld [vmem:[#allocation0] sm:$0x3]  }
  0x2a   :  { %106 = vrot.lane.b32.xlu0 %v105_v17, %s373_s23  ;;  %v227_v34 = vld [vmem:[#allocation0] sm:$0x3]   ;;  %s391_s23 = smov 93  }
  0x2b   :  { %112 = vrot.lane.b32.xlu1 %v111_v18, %s374_s24  ;;  %v233_v35 = vld [vmem:[#allocation0] sm:$0x3]   ;;  %s392_s24 = smov 92  }
  0x2c   :  { %v239_v36 = vld [vmem:[#allocation0] sm:$0x3]  }
  0x2d   :  { %v6_v37 = vld [vmem:[#allocation0] sm:$0x3]  }
  0x2e   :  { %118 = vrot.lane.b32.xlu0 %v117_v19, %s375_s26  ;;  %8 = vst.msk [vmem:[%s580_s1] ss:$42 sm:$0x3] %vm7_vm0, %v6_v37   ;;  %v245_v38 = vld [vmem:[#allocation0] sm:$0x3]   ;;  %s394_s26 = smov 90  }
  0x2f   :  { %124 = vrot.lane.b32.xlu1 %v123_v20, %s376_s27  ;;  %v251_v39 = vld [vmem:[#allocation0] sm:$0x3]   ;;  %s395_s27 = smov 89  }
  0x30   :  { %v257_v40 = vld [vmem:[#allocation0] sm:$0x3]  }
  0x31   :  { %v263_v41 = vld [vmem:[#allocation0] sm:$0x3]  }
  0x32   :  { %130 = vrot.lane.b32.xlu0 %v129_v21, %s377_s30  ;;  %v269_v42 = vld [vmem:[#allocation0] sm:$0x3]  }
  0x33   :  { %138 = vrot.lane.b32.xlu1 %v137_v22, %s378_s2 }
  0x36   :  { %146 = vrot.lane.b32.xlu0 %v145_v23, %s379_s5 }
  0x37   :  { %154 = vrot.lane.b32.xlu1 %v153_v24, %s380_s6 }
  0x3a   :  { %162 = vrot.lane.b32.xlu0 %v161_v25, %s381_s8 }
  0x3b   :  { %170 = vrot.lane.b32.xlu1 %v169_v26, %s382_s9 }
  0x3e   :  { %178 = vrot.lane.b32.xlu0 %v177_v27, %s383_s12 }
  0x3f   :  { %186 = vrot.lane.b32.xlu1 %v185_v28, %s384_s13 }
  0x42   :  { %194 = vrot.lane.b32.xlu0 %v193_v29, %s385_s15 }
  0x43   :  { %202 = vrot.lane.b32.xlu1 %v201_v30, %s386_s16 }
  0x46   :  { %210 = vrot.lane.b32.xlu0 %v209_v31, %s387_s17 }
  0x47   :  { %216 = vrot.lane.b32.xlu1 %v215_v32, %s388_s18 }
  0x4a   :  { %222 = vrot.lane.b32.xlu0 %v221_v33, %s389_s19 }
  0x4b   :  { %228 = vrot.lane.b32.xlu1 %v227_v34, %s390_s20 }
  0x4e   :  { %234 = vrot.lane.b32.xlu0 %v233_v35, %s391_s23 }
  0x4f   :  { %240 = vrot.lane.b32.xlu1 %v239_v36, %s392_s24 }
  0x52   :  { %246 = vrot.lane.b32.xlu0 %v245_v38, %s393_s25 }
  0x53   :  { %252 = vrot.lane.b32.xlu1 %v251_v39, %s394_s26 }
  0x56   :  { %258 = vrot.lane.b32.xlu0 %v257_v40, %s395_s27 }
  0x57   :  { %264 = vrot.lane.b32.xlu1 %v263_v41, %s396_s28 }
  0x5a   :  { %270 = vrot.lane.b32.xlu0 %v269_v42, %s397_s29 }
  0x7c   :  { %v11_v43 = vpop.permute.xlu0 %10  }
  0x7d   :  { %v23_v44 = vpop.permute.xlu1 %22   ;;  %275 = vst.msk [vmem:[%s580_s1 + $0x1] ss:$42 sm:$0x3] %vm7_vm0, %v11_v43  }
  0x7e   :  { %277 = vst.msk [vmem:[%s580_s1 + $0x3] ss:$42 sm:$0x3] %vm7_vm0, %v23_v44  }
  0x80   :  { %v17_v45 = vpop.permute.xlu0 %16  }
  0x81   :  { %v29_v46 = vpop.permute.xlu1 %28   ;;  %276 = vst.msk [vmem:[%s580_s1 + $0x2] ss:$42 sm:$0x3] %vm7_vm0, %v17_v45  }
  0x82   :  { %278 = vst.msk [vmem:[%s580_s1 + $0x4] ss:$42 sm:$0x3] %vm7_vm0, %v29_v46  }
  0x84   :  { %v35_v47 = vpop.permute.xlu0 %34  }
  0x85   :  { %v41_v48 = vpop.permute.xlu1 %40   ;;  %279 = vst.msk [vmem:[%s580_s1 + $0x5] ss:$42 sm:$0x3] %vm7_vm0, %v35_v47  }
  0x86   :  { %280 = vst.msk [vmem:[%s580_s1 + $0x6] ss:$42 sm:$0x3] %vm7_vm0, %v41_v48  }
  0x88   :  { %v47_v49 = vpop.permute.xlu0 %46  }
  0x89   :  { %v53_v50 = vpop.permute.xlu1 %52   ;;  %281 = vst.msk [vmem:[%s580_s1 + $0x7] ss:$42 sm:$0x3] %vm7_vm0, %v47_v49  }
  0x8a   :  { %282 = vst.msk [vmem:[%s580_s1 + $0x8] ss:$42 sm:$0x3] %vm7_vm0, %v53_v50  }
  0x8c   :  { %v59_v51 = vpop.permute.xlu0 %58  }
  0x8d   :  { %v65_v52 = vpop.permute.xlu1 %64   ;;  %283 = vst.msk [vmem:[%s580_s1 + $0x9] ss:$42 sm:$0x3] %vm7_vm0, %v59_v51  }
  0x8e   :  { %284 = vst.msk [vmem:[%s580_s1 + $0xa] ss:$42 sm:$0x3] %vm7_vm0, %v65_v52  }
  0x90   :  { %v71_v53 = vpop.permute.xlu0 %70  }
  0x91   :  { %v77_v54 = vpop.permute.xlu1 %76   ;;  %285 = vst.msk [vmem:[%s580_s1 + $0xb] ss:$42 sm:$0x3] %vm7_vm0, %v71_v53  }
  0x92   :  { %286 = vst.msk [vmem:[%s580_s1 + $0xc] ss:$42 sm:$0x3] %vm7_vm0, %v77_v54  }
  0x94   :  { %v83_v55 = vpop.permute.xlu0 %82  }
  0x95   :  { %v89_v56 = vpop.permute.xlu1 %88   ;;  %287 = vst.msk [vmem:[%s580_s1 + $0xd] ss:$42 sm:$0x3] %vm7_vm0, %v83_v55  }
  0x96   :  { %288 = vst.msk [vmem:[%s580_s1 + $0xe] ss:$42 sm:$0x3] %vm7_vm0, %v89_v56  }
  0x98   :  { %v95_v57 = vpop.permute.xlu0 %94  }
  0x99   :  { %v101_v58 = vpop.permute.xlu1 %100   ;;  %289 = vst.msk [vmem:[%s580_s1 + $0xf] ss:$42 sm:$0x3] %vm7_vm0, %v95_v57  }
  0x9a   :  { %290 = vst.msk [vmem:[%s580_s1 + $0x10] ss:$42 sm:$0x3] %vm7_vm0, %v101_v58  }
  0x9c   :  { %v107_v59 = vpop.permute.xlu0 %106  }
  0x9d   :  { %v113_v60 = vpop.permute.xlu1 %112   ;;  %291 = vst.msk [vmem:[%s580_s1 + $0x11] ss:$42 sm:$0x3] %vm7_vm0, %v107_v59  }
  0x9e   :  { %292 = vst.msk [vmem:[%s580_s1 + $0x12] ss:$42 sm:$0x3] %vm7_vm0, %v113_v60  }
  0xa0   :  { %v119_v61 = vpop.permute.xlu0 %118  }
  0xa1   :  { %v125_v62 = vpop.permute.xlu1 %124   ;;  %293 = vst.msk [vmem:[%s580_s1 + $0x13] ss:$42 sm:$0x3] %vm7_vm0, %v119_v61  }
  0xa2   :  { %294 = vst.msk [vmem:[%s580_s1 + $0x14] ss:$42 sm:$0x3] %vm7_vm0, %v125_v62  }
  0xa4   :  { %v131_v63 = vpop.permute.xlu0 %130  }
  0xa5   :  { %v139_v0 = vpop.permute.xlu1 %138   ;;  %295 = vst.msk [vmem:[%s580_s1 + $0x15] ss:$42 sm:$0x3] %vm7_vm0, %v131_v63  }
  0xa6   :  { %296 = vst.msk [vmem:[%s580_s1 + $0x40] ss:$-42 sm:$0x3] %vm7_vm0, %v139_v0  }
  0xa8   :  { %v147_v1 = vpop.permute.xlu0 %146  }
  0xa9   :  { %v155_v2 = vpop.permute.xlu1 %154   ;;  %297 = vst.msk [vmem:[%s580_s1 + $0x41] ss:$-42 sm:$0x3] %vm7_vm0, %v147_v1  }
  0xaa   :  { %298 = vst.msk [vmem:[%s580_s1 + $0x42] ss:$-42 sm:$0x3] %vm7_vm0, %v155_v2  }
  0xac   :  { %v163_v3 = vpop.permute.xlu0 %162  }
  0xad   :  { %v171_v4 = vpop.permute.xlu1 %170   ;;  %299 = vst.msk [vmem:[%s580_s1 + $0x43] ss:$-42 sm:$0x3] %vm7_vm0, %v163_v3  }
  0xae   :  { %300 = vst.msk [vmem:[%s580_s1 + $0x44] ss:$-42 sm:$0x3] %vm7_vm0, %v171_v4  }
  0xb0   :  { %v179_v5 = vpop.permute.xlu0 %178  }
  0xb1   :  { %v187_v6 = vpop.permute.xlu1 %186   ;;  %301 = vst.msk [vmem:[%s580_s1 + $0x45] ss:$-42 sm:$0x3] %vm7_vm0, %v179_v5  }
  0xb2   :  { %302 = vst.msk [vmem:[%s580_s1 + $0x46] ss:$-42 sm:$0x3] %vm7_vm0, %v187_v6  }
  0xb4   :  { %v195_v7 = vpop.permute.xlu0 %194  }
  0xb5   :  { %v203_v8 = vpop.permute.xlu1 %202   ;;  %303 = vst.msk [vmem:[%s580_s1 + $0x47] ss:$-42 sm:$0x3] %vm7_vm0, %v195_v7  }
  0xb6   :  { %304 = vst.msk [vmem:[%s580_s1 + $0x48] ss:$-42 sm:$0x3] %vm7_vm0, %v203_v8  }
  0xb8   :  { %v211_v9 = vpop.permute.xlu0 %210  }
  0xb9   :  { %v217_v10 = vpop.permute.xlu1 %216   ;;  %305 = vst.msk [vmem:[%s580_s1 + $0x49] ss:$-42 sm:$0x3] %vm7_vm0, %v211_v9  }
  0xba   :  { %306 = vst.msk [vmem:[%s580_s1 + $0x20] ss:$42 sm:$0x3] %vm7_vm0, %v217_v10  }
  0xbc   :  { %v223_v11 = vpop.permute.xlu0 %222  }
  0xbd   :  { %v229_v12 = vpop.permute.xlu1 %228   ;;  %307 = vst.msk [vmem:[%s580_s1 + $0x21] ss:$42 sm:$0x3] %vm7_vm0, %v223_v11  }
  0xbe   :  { %308 = vst.msk [vmem:[%s580_s1 + $0x22] ss:$42 sm:$0x3] %vm7_vm0, %v229_v12  }
  0xc0   :  { %v235_v13 = vpop.permute.xlu0 %234  }
  0xc1   :  { %v241_v14 = vpop.permute.xlu1 %240   ;;  %309 = vst.msk [vmem:[%s580_s1 + $0x23] ss:$42 sm:$0x3] %vm7_vm0, %v235_v13  }
  0xc2   :  { %310 = vst.msk [vmem:[%s580_s1 + $0x24] ss:$42 sm:$0x3] %vm7_vm0, %v241_v14  }
  0xc4   :  { %v247_v15 = vpop.permute.xlu0 %246  }
  0xc5   :  { %v253_v16 = vpop.permute.xlu1 %252   ;;  %311 = vst.msk [vmem:[%s580_s1 + $0x25] ss:$42 sm:$0x3] %vm7_vm0, %v247_v15  }
  0xc6   :  { %312 = vst.msk [vmem:[%s580_s1 + $0x26] ss:$42 sm:$0x3] %vm7_vm0, %v253_v16  }
  0xc8   :  { %v259_v17 = vpop.permute.xlu0 %258  }
  0xc9   :  { %v265_v18 = vpop.permute.xlu1 %264   ;;  %313 = vst.msk [vmem:[%s580_s1 + $0x27] ss:$42 sm:$0x3] %vm7_vm0, %v259_v17  }
  0xca   :  { %314 = vst.msk [vmem:[%s580_s1 + $0x28] ss:$42 sm:$0x3] %vm7_vm0, %v265_v18  }
  0xcc   :  { %v271_v19 = vpop.permute.xlu0 %270  }
  0xcd   :  { %315 = vst.msk [vmem:[%s580_s1 + $0x29] ss:$42 sm:$0x3] %vm7_vm0, %v271_v19  }

// kernel: dummy_module_forward.1
= control target key start
LH: loop header
LB: loop body
LE: loop exit
PB: predicated region body
PF: predicated region fallthrough
CT: control target
= control target key end

     0   :  { %vm127_vm0 = vcmask 1045504   ;;  %v2420_v1 = vmov 0.0   ;;  %s2421_s14 = smov 110   ;;  %s2422_s15 = smov 111   ;;  %vm93_vm1 = vcmask 48128   ;;  %v291_v14 = vlaneseq  ;;  %s3150_s0 = inlined_call_operand.vmem [shape: f32[6,256], index: 0, kind: input, shape index: {}]   ;;  %s3151_s1 = inlined_call_operand.vmem [shape: f32[9,84,6], index: 1, kind: input, shape index: {}]   ;;  %s3152_s2 = inlined_call_operand.vmem [shape: f32[84,1], index: 2, kind: input, shape index: {}]   ;;  %s3153_s3 = inlined_call_operand.vmem [shape: f32[84,256], index: 3, kind: output, shape index: {}]  }
   0x1   :  { %v14_v0 = vld [vmem:[%s3150_s0] sm:$0x3f]  ;;  %198 = vmatprep.mubr.f32.mxu1 %v2420_v1  ;;  %1044 = vmatprep.mubr.f32.mxu0 %v2420_v1  ;;  %v15_v2 = vld [vmem:[%s3150_s0 + $0x8] sm:$0x3f]  ;;  %s2423_s0 = smov 127   ;;  %v84_v5 = vld [vmem:[%s3151_s1 + $0x10] sm:$0xff] }
   0x2   :  { %1133 = vrot.lane.b32.xlu1 %v14_v0, %s2421_s14  ;;  %922 = vrot.lane.b32.xlu0 %v14_v0, %s2422_s15  ;;  %v82_v3 = vld [vmem:[%s3151_s1] sm:$0xff]  ;;  %v83_v4 = vld [vmem:[%s3151_s1 + $0x8] sm:$0xff]  ;;  %s2424_s24 = smov 96   ;;  %s2425_s27 = smov 126   ;;  %v2515_v15 = vand.u32 127, %v291_v14 }
   0x3   :  { %2003 = vmatprep.subr.msk.mxu1 %vm127_vm0, %v15_v2  ;;  %v85_v6 = vld [vmem:[%s3151_s1 + $0x18] sm:$0xff]  ;;  %v86_v7 = vld [vmem:[%s3151_s1 + $0x20] sm:$0xff]  ;;  %s2426_s30 = smov 95   ;;  %v87_v8 = vld [vmem:[%s3151_s1 + $0x28] sm:$0xff]  ;;  %s2427_s6 = smov 112  }
   0x4   :  { %2004 = vmatpush1.msk.msra.mxu1 %vm127_vm0, %v14_v0  ;;  %v88_v9 = vld [vmem:[%s3151_s1 + $0x30] sm:$0xff]  ;;  %v89_v10 = vld [vmem:[%s3151_s1 + $0x38] sm:$0xff]  ;;  %s2428_s11 = smov 94   ;;  %v90_v11 = vld [vmem:[%s3151_s1 + $0x40] sm:$0xff]  ;;  %vm1137_vm2 = vcmp.lt.s32.totalorder %v2515_v15, 110  ;;  %vm926_vm3 = vcmp.lt.s32.totalorder %v2515_v15, 111 }
   0x5   :  { %2005 = vmatmul.mubr.msk.f32.vlgmr.msra.gmra.mrb[0].mxu1 %vm93_vm1, %v82_v3  ;;  %v91_v12 = vld [vmem:[%s3151_s1 + $0x48] sm:$0xff]  ;;  %v92_v13 = vld [vmem:[%s3151_s1 + $0x50] sm:$0xf]  ;;  %v2088_v23 = vld [vmem:[%s3151_s1 + $0x160] sm:$0xff]  ;;  %vm293_vm4 = vcmp.lt.s32.totalorder %v2515_v15, 127  ;;  %vm1348_vm5 = vcmp.lt.s32.totalorder %v2515_v15, 96 }
   0x6   :  { %1135 = vrot.lane.b32.xlu1 %v15_v2, %s2421_s14  ;;  %924 = vrot.lane.b32.xlu0 %v15_v2, %s2422_s15  ;;  %v2016_v29 = vld [vmem:[%s3151_s1 + $0x58] sm:$0xff]  ;;  %v2089_v30 = vld [vmem:[%s3151_s1 + $0x168] sm:$0xff]  ;;  %vm504_vm6 = vcmp.lt.s32.totalorder %v2515_v15, 126  ;;  %vm715_vm7 = vcmp.lt.s32.totalorder %v2515_v15, 112  ;;  %vm1559_vm8 = vcmp.lt.s32.totalorder %v2515_v15, 95  ;;  %vm1770_vm9 = vcmp.lt.s32.totalorder %v2515_v15, 94 }
   0x7   :  { %204 = vmatprep.mubr.f32.mxu1 %v2420_v1  ;;  %v2017_v33 = vld [vmem:[%s3151_s1 + $0x60] sm:$0xff]  ;;  %v2090_v34 = vld [vmem:[%s3151_s1 + $0x170] sm:$0xff]  ;;  %v2018_v38 = vld [vmem:[%s3151_s1 + $0x68] sm:$0xff] }
   0x8   :  { %v2091_v39 = vld [vmem:[%s3151_s1 + $0x178] sm:$0xff]  ;;  %v2019_v44 = vld [vmem:[%s3151_s1 + $0x70] sm:$0xff]  ;;  %v2092_v45 = vld [vmem:[%s3151_s1 + $0x180] sm:$0xff] }
   0x9   :  { %2006 = vmatmul.mubr.msk.f32.gmra.mrb[2].mxu1 %vm93_vm1, %v83_v4  ;;  %v2020_v48 = vld [vmem:[%s3151_s1 + $0x78] sm:$0xff]  ;;  %v2093_v49 = vld [vmem:[%s3151_s1 + $0x188] sm:$0xff]  ;;  %v2021_v51 = vld [vmem:[%s3151_s1 + $0x80] sm:$0xff] }
   0xa   :  { %289 = vrot.lane.b32.xlu1 %v15_v2, %s2423_s0  ;;  %287 = vrot.lane.b32.xlu0 %v14_v0, %s2423_s0  ;;  %v2112_v52 = vld [vmem:[%s3151_s1 + $0x1b8] sm:$0xff]  ;;  %v2022_v55 = vld [vmem:[%s3151_s1 + $0x88] sm:$0xff] }
   0xb   :  { %210 = vmatprep.mubr.f32.mxu1 %v2420_v1  ;;  %v2113_v56 = vld [vmem:[%s3151_s1 + $0x1c0] sm:$0xff]  ;;  %v2023_v57 = vld [vmem:[%s3151_s1 + $0x90] sm:$0xff]  ;;  %v2114_v58 = vld [vmem:[%s3151_s1 + $0x1c8] sm:$0xff] }
   0xc   :  { %v2024_v59 = vld [vmem:[%s3151_s1 + $0x98] sm:$0xff]  ;;  %v2115_v60 = vld [vmem:[%s3151_s1 + $0x1d0] sm:$0xff]  ;;  %v2025_v61 = vld [vmem:[%s3151_s1 + $0xa0] sm:$0xff] }
   0xd   :  { %2007 = vmatmul.mubr.msk.f32.gmra.mrb[4].mxu1 %vm93_vm1, %v84_v5  ;;  %v2116_v62 = vld [vmem:[%s3151_s1 + $0x1d8] sm:$0xff]  ;;  %v2026_v63 = vld [vmem:[%s3151_s1 + $0xa8] sm:$0xf]  ;;  %v2429_v5 = vmov 0   ;;  %v2121_v14 = vld [vmem:[%s3151_s1 + $0x200] sm:$0xff] }
   0xe   :  { %1346 = vrot.lane.b32.xlu1 %v15_v2, %s2424_s24  ;;  %1344 = vrot.lane.b32.xlu0 %v14_v0, %s2424_s24  ;;  %v2118_v3 = vld [vmem:[%s3151_s1 + $0x1e8] sm:$0xff]  ;;  %v2071_v15 = vld [vmem:[%s3151_s1 + $0x140] sm:$0xff] }
   0xf   :  { %216 = vmatprep.mubr.f32.mxu1 %v2420_v1  ;;  %2418 = vset.pattern.permute.xlu0 %v2429_v5 }
  0x10   :  { %2419 = vset.pattern.permute.xlu1 %v2429_v5  ;;  %v2096_v5 = vld [vmem:[%s3151_s1 + $0x1a0] sm:$0xff] }
  0x11   :  { %2008 = vmatmul.mubr.msk.f32.gmra.mrb[6].mxu1 %vm93_vm1, %v85_v6  ;;  %v16_v6 = vld [vmem:[%s3152_s2] sm:$0xff] }
  0x12   :  { %502 = vrot.lane.b32.xlu1 %v15_v2, %s2425_s27  ;;  %500 = vrot.lane.b32.xlu0 %v14_v0, %s2425_s27 }
  0x13   :  { %222 = vmatprep.mubr.f32.mxu1 %v2420_v1 }
  0x15   :  { %2009 = vmatmul.mubr.msk.f32.gmra.mrb[8].mxu1 %vm93_vm1, %v86_v7  ;;  %v2041_v7 = vld [vmem:[%s3151_s1 + $0xb8] sm:$0xff] }
  0x16   :  { %1557 = vrot.lane.b32.xlu1 %v15_v2, %s2426_s30  ;;  %1555 = vrot.lane.b32.xlu0 %v14_v0, %s2426_s30 }
  0x17   :  { %228 = vmatprep.mubr.f32.mxu1 %v2420_v1 }
  0x19   :  { %2010 = vmatmul.mubr.msk.f32.gmra.mrb[10].mxu1 %vm93_vm1, %v87_v8  ;;  %v2119_v8 = vld [vmem:[%s3151_s1 + $0x1f0] sm:$0xff] }
  0x1a   :  { %713 = vrot.lane.b32.xlu1 %v15_v2, %s2427_s6  ;;  %711 = vrot.lane.b32.xlu0 %v14_v0, %s2427_s6 }
  0x1b   :  { %234 = vmatprep.mubr.f32.mxu1 %v2420_v1 }
  0x1d   :  { %2011 = vmatmul.mubr.msk.f32.gmra.mrb[12].mxu1 %vm93_vm1, %v88_v9  ;;  %v17_v9 = vld [vmem:[%s3152_s2 + $0x8] sm:$0xff] }
  0x1e   :  { %240 = vmatprep.mubr.f32.mxu1 %v2420_v1  ;;  %1768 = vrot.lane.b32.xlu1 %v15_v2, %s2428_s11  ;;  %v2040_v2 = vld [vmem:[%s3151_s1 + $0xb0] sm:$0xff] }
  0x1f   :  { %1766 = vrot.lane.b32.xlu0 %v14_v0, %s2428_s11  ;;  %v2117_v0 = vld [vmem:[%s3151_s1 + $0x1e0] sm:$0xff] }
  0x21   :  { %2012 = vmatmul.mubr.msk.f32.gmra.mrb[14].mxu1 %vm93_vm1, %v89_v10  ;;  %v2042_v10 = vld [vmem:[%s3151_s1 + $0xc0] sm:$0xff] }
  0x22   :  { %246 = vmatprep.mubr.f32.mxu1 %v2420_v1  ;;  %34 = vperm.xlu1 %2419, %v17_v9   ;;  %v2098_v9 = vld [vmem:[%s3151_s1 + $0x1b0] sm:$0xf] }
  0x23   :  { %29 = vperm.xlu0 %2418, %v16_v6   ;;  %v2168_v6 = vld [vmem:[%s3151_s1 + $0x2a8] sm:$0xff] }
  0x25   :  { %2013 = vmatmul.mubr.msk.f32.gmra.mrb[16].mxu1 %vm93_vm1, %v90_v11  ;;  %v2120_v11 = vld [vmem:[%s3151_s1 + $0x1f8] sm:$0xff] }
  0x26   :  { %252 = vmatprep.mubr.f32.mxu1 %v2420_v1 }
  0x29   :  { %2014 = vmatmul.mubr.msk.f32.gmra.mrb[18].mxu1 %vm93_vm1, %v91_v12  ;;  %v18_v12 = vld [vmem:[%s3152_s2 + $0x10] sm:$0xff] }
  0x2a   :  { %258 = vmatprep.mubr.f32.mxu1 %v2420_v1  ;;  %39 = vperm.xlu1 %2419, %v18_v12   ;;  %v2185_v12 = vld [vmem:[%s3151_s1 + $0x2c8] sm:$0xff] }
  0x2d   :  { %2015 = vmatmul.mubr.msk.f32.gmra.mrb[20].mxu1 %vm93_vm1, %v92_v13  ;;  %v2043_v13 = vld [vmem:[%s3151_s1 + $0xc8] sm:$0xff] }
  0x2e   :  { %411 = vmatprep.mubr.f32.mxu1 %v2420_v1 }
  0x74   :  { %v1134_v16 = vpop.permute.xlu1 %1133  ;;  %v923_v17 = vpop.permute.xlu0 %922 }
  0x78   :  { %v1136_v18 = vpop.permute.xlu1 %1135  ;;  %v925_v19 = vpop.permute.xlu0 %924 }
  0x79   :  { %v1139_v20 = vsel %vm1137_vm2, %v1136_v18, %v1134_v16  ;;  %v2519_v21 = vsel %vm926_vm3, %v925_v19, %v923_v17  ;;  %v2521_v22 = vsel %vm926_vm3, %v923_v17, %v925_v19  ;;  %v1138_v24 = vsel %vm1137_vm2, %v1134_v16, %v1136_v18  ;;  %v19_v16 = vld [vmem:[%s3152_s2 + $0x18] sm:$0xff]  ;;  %v2044_v17 = vld [vmem:[%s3151_s1 + $0xd0] sm:$0xff]  ;;  %v2122_v18 = vld [vmem:[%s3151_s1 + $0x208] sm:$0xf] }
  0x7a   :  { %2099 = vmatprep.subr.msk.mxu0 %vm127_vm0, %v2519_v21  ;;  %44 = vperm.xlu0 %2418, %v19_v16   ;;  %v20_v19 = vld [vmem:[%s3152_s2 + $0x20] sm:$0xff] }
  0x7b   :  { %2100 = vmatpush1.msk.msra.mxu0 %vm127_vm0, %v2521_v22  ;;  %49 = vperm.xlu1 %2419, %v20_v19   ;;  %v2188_v16 = vld [vmem:[%s3151_s1 + $0x2e0] sm:$0xff]  ;;  %v2191_v19 = vld [vmem:[%s3151_s1 + $0x2f8] sm:$0xff] }
  0x7c   :  { %v290_v25 = vpop.permute.xlu1 %289  ;;  %2101 = vmatmul.mubr.msk.f32.vlgmr.msra.gmra.mrb[0].mxu0 %vm93_vm1, %v2088_v23  ;;  %2123 = vmatprep.subr.msk.mxu0 %vm127_vm0, %v1139_v20  ;;  %v288_v26 = vpop.permute.xlu0 %287  ;;  %v2045_v23 = vld [vmem:[%s3151_s1 + $0xd8] sm:$0xff] }
  0x7d   :  { %v294_v27 = vsel %vm293_vm4, %v288_v26, %v290_v25  ;;  %v295_v28 = vsel %vm293_vm4, %v290_v25, %v288_v26  ;;  %2124 = vmatpush1.msk.msra.mxu0 %vm127_vm0, %v1138_v24  ;;  %1050 = vmatprep.mubr.f32.mxu0 %v2420_v1  ;;  %v2136_v24 = vld [vmem:[%s3151_s1 + $0x210] sm:$0xff]  ;;  %v21_v25 = vld [vmem:[%s3152_s2 + $0x28] sm:$0xff] }
  0x7e   :  { %2027 = vmatprep.subr.msk.mxu1 %vm127_vm0, %v295_v28  ;;  %54 = vperm.xlu0 %2418, %v21_v25   ;;  %v22_v28 = vld [vmem:[%s3152_s2 + $0x30] sm:$0xff] }
  0x7f   :  { %2028 = vmatpush1.msk.msra.mxu1 %vm127_vm0, %v294_v27  ;;  %59 = vperm.xlu1 %2419, %v22_v28  }
  0x80   :  { %2029 = vmatmul.mubr.msk.f32.vlgmr.msra.gmra.mrb[0].mxu1 %vm93_vm1, %v2016_v29  ;;  %2102 = vmatmul.mubr.msk.f32.gmra.mrb[2].mxu0 %vm93_vm1, %v2089_v30  ;;  %v1347_v31 = vpop.permute.xlu1 %1346  ;;  %v1345_v32 = vpop.permute.xlu0 %1344  ;;  %v23_v29 = vld [vmem:[%s3152_s2 + $0x38] sm:$0xff]  ;;  %v2046_v30 = vld [vmem:[%s3151_s1 + $0xe0] sm:$0xff] }
  0x81   :  { %417 = vmatprep.mubr.f32.mxu1 %v2420_v1  ;;  %1056 = vmatprep.mubr.f32.mxu0 %v2420_v1  ;;  %v1350_v35 = vsel %vm1348_vm5, %v1347_v31, %v1345_v32  ;;  %v1349_v53 = vsel %vm1348_vm5, %v1345_v32, %v1347_v31  ;;  %v2137_v31 = vld [vmem:[%s3151_s1 + $0x218] sm:$0xff]  ;;  %v24_v32 = vld [vmem:[%s3152_s2 + $0x40] sm:$0xff] }
  0x82   :  { %2147 = vmatprep.subr.msk.mxu0 %vm127_vm0, %v1350_v35  ;;  %64 = vperm.xlu0 %2418, %v23_v29   ;;  %v2138_v35 = vld [vmem:[%s3151_s1 + $0x220] sm:$0xff] }
  0x83   :  { %69 = vperm.xlu1 %2419, %v24_v32  }
  0x84   :  { %2030 = vmatmul.mubr.msk.f32.gmra.mrb[2].mxu1 %vm93_vm1, %v2017_v33  ;;  %2103 = vmatmul.mubr.msk.f32.gmra.mrb[4].mxu0 %vm93_vm1, %v2090_v34  ;;  %v503_v36 = vpop.permute.xlu1 %502  ;;  %v501_v37 = vpop.permute.xlu0 %500  ;;  %v25_v33 = vld [vmem:[%s3152_s2 + $0x48] sm:$0xff] }
  0x85   :  { %423 = vmatprep.mubr.f32.mxu1 %v2420_v1  ;;  %1062 = vmatprep.mubr.f32.mxu0 %v2420_v1  ;;  %v505_v40 = vsel %vm504_vm6, %v501_v37, %v503_v36  ;;  %v506_v41 = vsel %vm504_vm6, %v503_v36, %v501_v37  ;;  %v2047_v34 = vld [vmem:[%s3151_s1 + $0xe8] sm:$0xff]  ;;  %v26_v36 = vld [vmem:[%s3152_s2 + $0x50] sm:$0xf] }
  0x86   :  { %2051 = vmatprep.subr.msk.mxu1 %vm127_vm0, %v506_v41  ;;  %74 = vperm.xlu0 %2418, %v25_v33   ;;  %v2048_v37 = vld [vmem:[%s3151_s1 + $0xf0] sm:$0xff]  ;;  %v2050_v41 = vld [vmem:[%s3151_s1 + $0x100] sm:$0xf] }
  0x87   :  { %2052 = vmatpush1.msk.msra.mxu1 %vm127_vm0, %v505_v40  ;;  %79 = vperm.xlu1 %2419, %v26_v36   ;;  %v2140_v40 = vld [vmem:[%s3151_s1 + $0x230] sm:$0xff] }
  0x88   :  { %2031 = vmatmul.mubr.msk.f32.gmra.mrb[4].mxu1 %vm93_vm1, %v2018_v38  ;;  %2104 = vmatmul.mubr.msk.f32.gmra.mrb[6].mxu0 %vm93_vm1, %v2091_v39  ;;  %v2572_v42 = vpop.permute.xlu1 %1557  ;;  %v2574_v43 = vpop.permute.xlu0 %1555  ;;  %v2139_v38 = vld [vmem:[%s3151_s1 + $0x228] sm:$0xff]  ;;  %v2049_v39 = vld [vmem:[%s3151_s1 + $0xf8] sm:$0xff] }
  0x89   :  { %429 = vmatprep.mubr.f32.mxu1 %v2420_v1  ;;  %1068 = vmatprep.mubr.f32.mxu0 %v2420_v1  ;;  %v1561_v54 = vsel %vm1559_vm8, %v2572_v42, %v2574_v43  ;;  %v1560_v26 = vsel %vm1559_vm8, %v2574_v43, %v2572_v42  ;;  %v2141_v42 = vld [vmem:[%s3151_s1 + $0x238] sm:$0xff]  ;;  %v2064_v43 = vld [vmem:[%s3151_s1 + $0x108] sm:$0xff] }
  0x8c   :  { %2032 = vmatmul.mubr.msk.f32.gmra.mrb[6].mxu1 %vm93_vm1, %v2019_v44  ;;  %2105 = vmatmul.mubr.msk.f32.gmra.mrb[8].mxu0 %vm93_vm1, %v2092_v45  ;;  %v714_v46 = vpop.permute.xlu1 %713  ;;  %v712_v47 = vpop.permute.xlu0 %711  ;;  %v2142_v44 = vld [vmem:[%s3151_s1 + $0x240] sm:$0xff]  ;;  %v2065_v45 = vld [vmem:[%s3151_s1 + $0x110] sm:$0xff] }
  0x8d   :  { %435 = vmatprep.mubr.f32.mxu1 %v2420_v1  ;;  %1074 = vmatprep.mubr.f32.mxu0 %v2420_v1  ;;  %v717_v50 = vsel %vm715_vm7, %v714_v46, %v712_v47  ;;  %v716_v4 = vsel %vm715_vm7, %v712_v47, %v714_v46  ;;  %v2143_v46 = vld [vmem:[%s3151_s1 + $0x248] sm:$0xff]  ;;  %v2144_v47 = vld [vmem:[%s3151_s1 + $0x250] sm:$0xff] }
  0x8e   :  { %2075 = vmatprep.subr.msk.mxu1 %vm127_vm0, %v717_v50  ;;  %v2068_v50 = vld [vmem:[%s3151_s1 + $0x128] sm:$0xff] }
  0x90   :  { %2033 = vmatmul.mubr.msk.f32.gmra.mrb[8].mxu1 %vm93_vm1, %v2020_v48  ;;  %2106 = vmatmul.mubr.msk.f32.gmra.mrb[10].mxu0 %vm93_vm1, %v2093_v49  ;;  %v2739_v20 = vpop.permute.xlu1 %1768  ;;  %v2067_v48 = vld [vmem:[%s3151_s1 + $0x120] sm:$0xff]  ;;  %v2145_v49 = vld [vmem:[%s3151_s1 + $0x258] sm:$0xff] }
  0x91   :  { %441 = vmatprep.mubr.f32.mxu1 %v2420_v1  ;;  %1255 = vmatprep.mubr.f32.mxu0 %v2420_v1 }
  0x94   :  { %2034 = vmatmul.mubr.msk.f32.gmra.mrb[10].mxu1 %vm93_vm1, %v2021_v51  ;;  %2125 = vmatmul.mubr.msk.f32.vlgmr.msra.gmra.mrb[0].mxu0 %vm93_vm1, %v2112_v52  ;;  %v2146_v51 = vld [vmem:[%s3151_s1 + $0x260] sm:$0xf]  ;;  %v2069_v52 = vld [vmem:[%s3151_s1 + $0x130] sm:$0xff] }
  0x95   :  { %2148 = vmatpush1.msk.msra.mxu0 %vm127_vm0, %v1349_v53  ;;  %447 = vmatprep.mubr.f32.mxu1 %v2420_v1  ;;  %v2160_v53 = vld [vmem:[%s3151_s1 + $0x268] sm:$0xff] }
  0x96   :  { %1261 = vmatprep.mubr.f32.mxu0 %v2420_v1  ;;  %2171 = vmatprep.subr.msk.mxu0 %vm127_vm0, %v1561_v54 }
  0x98   :  { %2035 = vmatmul.mubr.msk.f32.gmra.mrb[12].mxu1 %vm93_vm1, %v2022_v55  ;;  %2126 = vmatmul.mubr.msk.f32.gmra.mrb[2].mxu0 %vm93_vm1, %v2113_v56  ;;  %v2070_v55 = vld [vmem:[%s3151_s1 + $0x138] sm:$0xff]  ;;  %v2161_v56 = vld [vmem:[%s3151_s1 + $0x270] sm:$0xff] }
  0x99   :  { %453 = vmatprep.mubr.f32.mxu1 %v2420_v1  ;;  %1267 = vmatprep.mubr.f32.mxu0 %v2420_v1 }
  0x9c   :  { %2036 = vmatmul.mubr.msk.f32.gmra.mrb[14].mxu1 %vm93_vm1, %v2023_v57  ;;  %2127 = vmatmul.mubr.msk.f32.gmra.mrb[4].mxu0 %vm93_vm1, %v2114_v58  ;;  %v2162_v57 = vld [vmem:[%s3151_s1 + $0x278] sm:$0xff]  ;;  %v2072_v58 = vld [vmem:[%s3151_s1 + $0x148] sm:$0xff] }
  0x9d   :  { %459 = vmatprep.mubr.f32.mxu1 %v2420_v1  ;;  %1273 = vmatprep.mubr.f32.mxu0 %v2420_v1 }
  0xa0   :  { %2037 = vmatmul.mubr.msk.f32.gmra.mrb[16].mxu1 %vm93_vm1, %v2024_v59  ;;  %2128 = vmatmul.mubr.msk.f32.gmra.mrb[6].mxu0 %vm93_vm1, %v2115_v60  ;;  %v2163_v59 = vld [vmem:[%s3151_s1 + $0x280] sm:$0xff]  ;;  %v2073_v60 = vld [vmem:[%s3151_s1 + $0x150] sm:$0xff] }
  0xa1   :  { %465 = vmatprep.mubr.f32.mxu1 %v2420_v1  ;;  %1279 = vmatprep.mubr.f32.mxu0 %v2420_v1 }
  0xa4   :  { %2038 = vmatmul.mubr.msk.f32.gmra.mrb[18].mxu1 %vm93_vm1, %v2025_v61  ;;  %2129 = vmatmul.mubr.msk.f32.gmra.mrb[8].mxu0 %vm93_vm1, %v2116_v62  ;;  %v2164_v61 = vld [vmem:[%s3151_s1 + $0x288] sm:$0xff]  ;;  %v2074_v62 = vld [vmem:[%s3151_s1 + $0x158] sm:$0xf] }
  0xa5   :  { %471 = vmatprep.mubr.f32.mxu1 %v2420_v1  ;;  %1285 = vmatprep.mubr.f32.mxu0 %v2420_v1 }
  0xa8   :  { %2039 = vmatmul.mubr.msk.f32.gmra.mrb[20].mxu1 %vm93_vm1, %v2026_v63  ;;  %2130 = vmatmul.mubr.msk.f32.gmra.mrb[10].mxu0 %vm93_vm1, %v2117_v0  ;;  %v2165_v63 = vld [vmem:[%s3151_s1 + $0x290] sm:$0xff] }
  0xa9   :  { %622 = vmatprep.mubr.f32.mxu1 %v2420_v1  ;;  %1291 = vmatprep.mubr.f32.mxu0 %v2420_v1  ;;  %v2094_v0 = vld [vmem:[%s3151_s1 + $0x190] sm:$0xff] }
  0xac   :  { %2053 = vmatmul.mubr.msk.f32.vlgmr.msra.gmra.mrb[0].mxu1 %vm93_vm1, %v2040_v2  ;;  %2131 = vmatmul.mubr.msk.f32.gmra.mrb[12].mxu0 %vm93_vm1, %v2118_v3  ;;  %v2166_v2 = vld [vmem:[%s3151_s1 + $0x298] sm:$0xff] }
  0xad   :  { %2076 = vmatpush1.msk.msra.mxu1 %vm127_vm0, %v716_v4  ;;  %628 = vmatprep.mubr.f32.mxu1 %v2420_v1  ;;  %v2095_v3 = vld [vmem:[%s3151_s1 + $0x198] sm:$0xff]  ;;  %v2167_v4 = vld [vmem:[%s3151_s1 + $0x2a0] sm:$0xff] }
  0xae   :  { %2208 = vmatprep.subr.msk.mxu1 %vm127_vm0, %v2519_v21  ;;  %1297 = vmatprep.mubr.f32.mxu0 %v2420_v1  ;;  %v2742_v21 = vpop.permute.xlu0 %1766 }
  0xaf   :  { %v1772_v27 = vsel %vm1770_vm9, %v2739_v20, %v2742_v21  ;;  %v1771_v54 = vsel %vm1770_vm9, %v2742_v21, %v2739_v20  ;;  %v2192_v20 = vld [vmem:[%s3151_s1 + $0x300] sm:$0xff]  ;;  %v2193_v21 = vld [vmem:[%s3151_s1 + $0x308] sm:$0xff] }
  0xb0   :  { %2054 = vmatmul.mubr.msk.f32.gmra.mrb[2].mxu1 %vm93_vm1, %v2041_v7  ;;  %2132 = vmatmul.mubr.msk.f32.gmra.mrb[14].mxu0 %vm93_vm1, %v2119_v8  ;;  %v2097_v7 = vld [vmem:[%s3151_s1 + $0x1a8] sm:$0xff]  ;;  %v2169_v8 = vld [vmem:[%s3151_s1 + $0x2b0] sm:$0xff] }
  0xb1   :  { %634 = vmatprep.mubr.f32.mxu1 %v2420_v1  ;;  %1303 = vmatprep.mubr.f32.mxu0 %v2420_v1 }
  0xb4   :  { %2055 = vmatmul.mubr.msk.f32.gmra.mrb[4].mxu1 %vm93_vm1, %v2042_v10  ;;  %2133 = vmatmul.mubr.msk.f32.gmra.mrb[16].mxu0 %vm93_vm1, %v2120_v11  ;;  %v2170_v10 = vld [vmem:[%s3151_s1 + $0x2b8] sm:$0xf]  ;;  %v2184_v11 = vld [vmem:[%s3151_s1 + $0x2c0] sm:$0xff] }
  0xb5   :  { %640 = vmatprep.mubr.f32.mxu1 %v2420_v1  ;;  %1309 = vmatprep.mubr.f32.mxu0 %v2420_v1 }
  0xb8   :  { %2056 = vmatmul.mubr.msk.f32.gmra.mrb[6].mxu1 %vm93_vm1, %v2043_v13  ;;  %2134 = vmatmul.mubr.msk.f32.gmra.mrb[18].mxu0 %vm93_vm1, %v2121_v14  ;;  %v2186_v13 = vld [vmem:[%s3151_s1 + $0x2d0] sm:$0xff]  ;;  %v2187_v14 = vld [vmem:[%s3151_s1 + $0x2d8] sm:$0xff] }
  0xb9   :  { %646 = vmatprep.mubr.f32.mxu1 %v2420_v1  ;;  %1315 = vmatprep.mubr.f32.mxu0 %v2420_v1 }
  0xbc   :  { %2057 = vmatmul.mubr.msk.f32.gmra.mrb[8].mxu1 %vm93_vm1, %v2044_v17  ;;  %2135 = vmatmul.mubr.msk.f32.gmra.mrb[20].mxu0 %vm93_vm1, %v2122_v18  ;;  %v2189_v17 = vld [vmem:[%s3151_s1 + $0x2e8] sm:$0xff]  ;;  %v2190_v18 = vld [vmem:[%s3151_s1 + $0x2f0] sm:$0xff] }
  0xbd   :  { %652 = vmatprep.mubr.f32.mxu1 %v2420_v1  ;;  %1466 = vmatprep.mubr.f32.mxu0 %v2420_v1 }
  0xc0   :  { %2058 = vmatmul.mubr.msk.f32.gmra.mrb[10].mxu1 %vm93_vm1, %v2045_v23  ;;  %2149 = vmatmul.mubr.msk.f32.vlgmr.msra.gmra.mrb[0].mxu0 %vm93_vm1, %v2136_v24  ;;  %v2194_v23 = vld [vmem:[%s3151_s1 + $0x310] sm:$0xf] }
  0xc1   :  { %2172 = vmatpush1.msk.msra.mxu0 %vm127_vm0, %v1560_v26  ;;  %658 = vmatprep.mubr.f32.mxu1 %v2420_v1 }
  0xc2   :  { %1472 = vmatprep.mubr.f32.mxu0 %v2420_v1  ;;  %2195 = vmatprep.subr.msk.mxu0 %vm127_vm0, %v1772_v27 }
  0xc4   :  { %2059 = vmatmul.mubr.msk.f32.gmra.mrb[12].mxu1 %vm93_vm1, %v2046_v30  ;;  %2150 = vmatmul.mubr.msk.f32.gmra.mrb[2].mxu0 %vm93_vm1, %v2137_v31 }
  0xc5   :  { %664 = vmatprep.mubr.f32.mxu1 %v2420_v1  ;;  %1478 = vmatprep.mubr.f32.mxu0 %v2420_v1 }
  0xc8   :  { %2060 = vmatmul.mubr.msk.f32.gmra.mrb[14].mxu1 %vm93_vm1, %v2047_v34  ;;  %2151 = vmatmul.mubr.msk.f32.gmra.mrb[4].mxu0 %vm93_vm1, %v2138_v35 }
  0xc9   :  { %670 = vmatprep.mubr.f32.mxu1 %v2420_v1  ;;  %1484 = vmatprep.mubr.f32.mxu0 %v2420_v1 }
  0xcc   :  { %2061 = vmatmul.mubr.msk.f32.gmra.mrb[16].mxu1 %vm93_vm1, %v2048_v37  ;;  %2152 = vmatmul.mubr.msk.f32.gmra.mrb[6].mxu0 %vm93_vm1, %v2139_v38 }
  0xcd   :  { %676 = vmatprep.mubr.f32.mxu1 %v2420_v1  ;;  %1490 = vmatprep.mubr.f32.mxu0 %v2420_v1 }
  0xd0   :  { %2062 = vmatmul.mubr.msk.f32.gmra.mrb[18].mxu1 %vm93_vm1, %v2049_v39  ;;  %2153 = vmatmul.mubr.msk.f32.gmra.mrb[8].mxu0 %vm93_vm1, %v2140_v40 }
  0xd1   :  { %682 = vmatprep.mubr.f32.mxu1 %v2420_v1  ;;  %1496 = vmatprep.mubr.f32.mxu0 %v2420_v1 }
  0xd4   :  { %2063 = vmatmul.mubr.msk.f32.gmra.mrb[20].mxu1 %vm93_vm1, %v2050_v41  ;;  %2154 = vmatmul.mubr.msk.f32.gmra.mrb[10].mxu0 %vm93_vm1, %v2141_v42 }
  0xd5   :  { %833 = vmatprep.mubr.f32.mxu1 %v2420_v1  ;;  %1502 = vmatprep.mubr.f32.mxu0 %v2420_v1 }
  0xd8   :  { %2077 = vmatmul.mubr.msk.f32.vlgmr.msra.gmra.mrb[0].mxu1 %vm93_vm1, %v2064_v43  ;;  %2155 = vmatmul.mubr.msk.f32.gmra.mrb[12].mxu0 %vm93_vm1, %v2142_v44  ;;  %v30_v43 = vpop.permute.xlu0 %29 }
  0xd9   :  { %2209 = vmatpush1.msk.msra.mxu1 %vm127_vm0, %v2521_v22  ;;  %839 = vmatprep.mubr.f32.mxu1 %v2420_v1  ;;  %v2066_v22 = vld [vmem:[%s3151_s1 + $0x118] sm:$0xff] }
  0xda   :  { %1508 = vmatprep.mubr.f32.mxu0 %v2420_v1 }
  0xdc   :  { %2078 = vmatmul.mubr.msk.f32.gmra.mrb[2].mxu1 %vm93_vm1, %v2065_v45  ;;  %2156 = vmatmul.mubr.msk.f32.gmra.mrb[14].mxu0 %vm93_vm1, %v2143_v46  ;;  %v35_v46 = vpop.permute.xlu1 %34 }
  0xdd   :  { %845 = vmatprep.mubr.f32.mxu1 %v2420_v1  ;;  %1514 = vmatprep.mubr.f32.mxu0 %v2420_v1 }
  0xe0   :  { %2079 = vmatmul.mubr.msk.f32.gmra.mrb[4].mxu1 %vm93_vm1, %v2066_v22  ;;  %2157 = vmatmul.mubr.msk.f32.gmra.mrb[16].mxu0 %vm93_vm1, %v2144_v47 }
  0xe1   :  { %851 = vmatprep.mubr.f32.mxu1 %v2420_v1  ;;  %1520 = vmatprep.mubr.f32.mxu0 %v2420_v1 }
  0xe4   :  { %2080 = vmatmul.mubr.msk.f32.gmra.mrb[6].mxu1 %vm93_vm1, %v2067_v48  ;;  %2158 = vmatmul.mubr.msk.f32.gmra.mrb[18].mxu0 %vm93_vm1, %v2145_v49 }
  0xe5   :  { %857 = vmatprep.mubr.f32.mxu1 %v2420_v1  ;;  %1526 = vmatprep.mubr.f32.mxu0 %v2420_v1 }
  0xe8   :  { %2081 = vmatmul.mubr.msk.f32.gmra.mrb[8].mxu1 %vm93_vm1, %v2068_v50  ;;  %2159 = vmatmul.mubr.msk.f32.gmra.mrb[20].mxu0 %vm93_vm1, %v2146_v51 }
  0xe9   :  { %863 = vmatprep.mubr.f32.mxu1 %v2420_v1  ;;  %1677 = vmatprep.mubr.f32.mxu0 %v2420_v1 }
  0xec   :  { %2082 = vmatmul.mubr.msk.f32.gmra.mrb[10].mxu1 %vm93_vm1, %v2069_v52  ;;  %2173 = vmatmul.mubr.msk.f32.vlgmr.msra.gmra.mrb[0].mxu0 %vm93_vm1, %v2160_v53 }
  0xed   :  { %2196 = vmatpush1.msk.msra.mxu0 %vm127_vm0, %v1771_v54  ;;  %869 = vmatprep.mubr.f32.mxu1 %v2420_v1  ;;  %v40_v54 = vpop.permute.xlu1 %39 }
  0xee   :  { %1683 = vmatprep.mubr.f32.mxu0 %v2420_v1 }
  0xf0   :  { %2083 = vmatmul.mubr.msk.f32.gmra.mrb[12].mxu1 %vm93_vm1, %v2070_v55  ;;  %2174 = vmatmul.mubr.msk.f32.gmra.mrb[2].mxu0 %vm93_vm1, %v2161_v56 }
  0xf1   :  { %875 = vmatprep.mubr.f32.mxu1 %v2420_v1  ;;  %1689 = vmatprep.mubr.f32.mxu0 %v2420_v1 }
  0xf4   :  { %2084 = vmatmul.mubr.msk.f32.gmra.mrb[14].mxu1 %vm93_vm1, %v2071_v15  ;;  %2175 = vmatmul.mubr.msk.f32.gmra.mrb[4].mxu0 %vm93_vm1, %v2162_v57 }
  0xf5   :  { %881 = vmatprep.mubr.f32.mxu1 %v2420_v1  ;;  %1695 = vmatprep.mubr.f32.mxu0 %v2420_v1 }
  0xf8   :  { %2085 = vmatmul.mubr.msk.f32.gmra.mrb[16].mxu1 %vm93_vm1, %v2072_v58  ;;  %2176 = vmatmul.mubr.msk.f32.gmra.mrb[6].mxu0 %vm93_vm1, %v2163_v59 }
  0xf9   :  { %887 = vmatprep.mubr.f32.mxu1 %v2420_v1  ;;  %1701 = vmatprep.mubr.f32.mxu0 %v2420_v1 }
  0xfc   :  { %2086 = vmatmul.mubr.msk.f32.gmra.mrb[18].mxu1 %vm93_vm1, %v2073_v60  ;;  %2177 = vmatmul.mubr.msk.f32.gmra.mrb[8].mxu0 %vm93_vm1, %v2164_v61  ;;  %v45_v60 = vpop.permute.xlu0 %44 }
  0xfd   :  { %893 = vmatprep.mubr.f32.mxu1 %v2420_v1  ;;  %1707 = vmatprep.mubr.f32.mxu0 %v2420_v1 }
 0x100   :  { %2087 = vmatmul.mubr.msk.f32.gmra.mrb[20].mxu1 %vm93_vm1, %v2074_v62  ;;  %2178 = vmatmul.mubr.msk.f32.gmra.mrb[10].mxu0 %vm93_vm1, %v2165_v63 }
 0x101   :  { %1080 = vmatprep.mubr.f32.mxu1 %v2420_v1  ;;  %1713 = vmatprep.mubr.f32.mxu0 %v2420_v1 }
 0x104   :  { %2107 = vmatmul.mubr.msk.f32.vlgmr.msra.gmra.mrb[12].mxu1 %vm93_vm1, %v2094_v0  ;;  %2179 = vmatmul.mubr.msk.f32.gmra.mrb[12].mxu0 %vm93_vm1, %v2166_v2 }
 0x105   :  { %1086 = vmatprep.mubr.f32.mxu1 %v2420_v1  ;;  %1719 = vmatprep.mubr.f32.mxu0 %v2420_v1 }
 0x108   :  { %2108 = vmatmul.mubr.msk.f32.gmra.mrb[14].mxu1 %vm93_vm1, %v2095_v3  ;;  %2180 = vmatmul.mubr.msk.f32.gmra.mrb[14].mxu0 %vm93_vm1, %v2167_v4  ;;  %v50_v4 = vpop.permute.xlu1 %49 }
 0x109   :  { %1092 = vmatprep.mubr.f32.mxu1 %v2420_v1  ;;  %1725 = vmatprep.mubr.f32.mxu0 %v2420_v1 }
 0x10c   :  { %2109 = vmatmul.mubr.msk.f32.gmra.mrb[16].mxu1 %vm93_vm1, %v2096_v5  ;;  %2181 = vmatmul.mubr.msk.f32.gmra.mrb[16].mxu0 %vm93_vm1, %v2168_v6 }
 0x10d   :  { %1098 = vmatprep.mubr.f32.mxu1 %v2420_v1  ;;  %1731 = vmatprep.mubr.f32.mxu0 %v2420_v1 }
 0x110   :  { %2110 = vmatmul.mubr.msk.f32.gmra.mrb[18].mxu1 %vm93_vm1, %v2097_v7  ;;  %2182 = vmatmul.mubr.msk.f32.gmra.mrb[18].mxu0 %vm93_vm1, %v2169_v8 }
 0x111   :  { %1104 = vmatprep.mubr.f32.mxu1 %v2420_v1  ;;  %1737 = vmatprep.mubr.f32.mxu0 %v2420_v1 }
 0x114   :  { %2111 = vmatmul.mubr.msk.f32.gmra.mrb[20].mxu1 %vm93_vm1, %v2098_v9  ;;  %2183 = vmatmul.mubr.msk.f32.gmra.mrb[20].mxu0 %vm93_vm1, %v2170_v10 }
 0x115   :  { %1888 = vmatprep.mubr.f32.mxu0 %v2420_v1 }
 0x118   :  { %2197 = vmatmul.mubr.msk.f32.vlgmr.msra.gmra.mrb[0].mxu0 %vm93_vm1, %v2184_v11  ;;  %v55_v11 = vpop.permute.xlu0 %54 }
 0x119   :  { %1894 = vmatprep.mubr.f32.mxu0 %v2420_v1 }
 0x11c   :  { %2198 = vmatmul.mubr.msk.f32.gmra.mrb[2].mxu0 %vm93_vm1, %v2185_v12 }
 0x11d   :  { %1900 = vmatprep.mubr.f32.mxu0 %v2420_v1 }
 0x120   :  { %2199 = vmatmul.mubr.msk.f32.gmra.mrb[4].mxu0 %vm93_vm1, %v2186_v13 }
 0x121   :  { %1906 = vmatprep.mubr.f32.mxu0 %v2420_v1 }
 0x124   :  { %2200 = vmatmul.mubr.msk.f32.gmra.mrb[6].mxu0 %vm93_vm1, %v2187_v14 }
 0x125   :  { %1912 = vmatprep.mubr.f32.mxu0 %v2420_v1 }
 0x128   :  { %2201 = vmatmul.mubr.msk.f32.gmra.mrb[8].mxu0 %vm93_vm1, %v2188_v16 }
 0x129   :  { %1918 = vmatprep.mubr.f32.mxu0 %v2420_v1 }
 0x12c   :  { %2202 = vmatmul.mubr.msk.f32.gmra.mrb[10].mxu0 %vm93_vm1, %v2189_v17 }
 0x12d   :  { %1924 = vmatprep.mubr.f32.mxu0 %v2420_v1 }
 0x130   :  { %2203 = vmatmul.mubr.msk.f32.gmra.mrb[12].mxu0 %vm93_vm1, %v2190_v18 }
 0x131   :  { %1930 = vmatprep.mubr.f32.mxu0 %v2420_v1 }
 0x134   :  { %2204 = vmatmul.mubr.msk.f32.gmra.mrb[14].mxu0 %vm93_vm1, %v2191_v19  ;;  %v60_v19 = vpop.permute.xlu1 %59 }
 0x135   :  { %1936 = vmatprep.mubr.f32.mxu0 %v2420_v1 }
 0x138   :  { %2205 = vmatmul.mubr.msk.f32.gmra.mrb[16].mxu0 %vm93_vm1, %v2192_v20 }
 0x139   :  { %1942 = vmatprep.mubr.f32.mxu0 %v2420_v1 }
 0x13c   :  { %2206 = vmatmul.mubr.msk.f32.gmra.mrb[18].mxu0 %vm93_vm1, %v2193_v21 }
 0x13d   :  { %1948 = vmatprep.mubr.f32.mxu0 %v2420_v1 }
 0x140   :  { %2207 = vmatmul.mubr.msk.f32.gmra.mrb[20].mxu0 %vm93_vm1, %v2194_v23 }
 0x1ab   :  { %v835_v24 = vpop.f32.mrb[0].mxu1 }
 0x1ac   :  { %v837_v25 = vpop.f32.mrb[1].mxu1  ;;  %v2210_v22 = vadd.f32 %v835_v24, %v30_v43 }
 0x1ad   :  { %v2212_v47 = vadd.f32 %v837_v25, %v30_v43 }
 0x1af   :  { %v841_v26 = vpop.f32.mrb[2].mxu1 }
 0x1b0   :  { %v843_v27 = vpop.f32.mrb[3].mxu1  ;;  %v2214_v52 = vadd.f32 %v841_v26, %v35_v46 }
 0x1b1   :  { %v2216_v53 = vadd.f32 %v843_v27, %v35_v46  ;;  %v65_v27 = vpop.permute.xlu0 %64 }
 0x1b3   :  { %v847_v28 = vpop.f32.mrb[4].mxu1 }
 0x1b4   :  { %v849_v29 = vpop.f32.mrb[5].mxu1  ;;  %v2218_v58 = vadd.f32 %v847_v28, %v40_v54 }
 0x1b5   :  { %v2220_v59 = vadd.f32 %v849_v29, %v40_v54 }
 0x1b7   :  { %v853_v30 = vpop.f32.mrb[6].mxu1 }
 0x1b8   :  { %v855_v31 = vpop.f32.mrb[7].mxu1  ;;  %v2222_v2 = vadd.f32 %v853_v30, %v45_v60 }
 0x1b9   :  { %v2224_v3 = vadd.f32 %v855_v31, %v45_v60 }
 0x1bb   :  { %v859_v32 = vpop.f32.mrb[8].mxu1 }
 0x1bc   :  { %v861_v33 = vpop.f32.mrb[9].mxu1  ;;  %v2226_v9 = vadd.f32 %v859_v32, %v50_v4 }
 0x1bd   :  { %v2228_v10 = vadd.f32 %v861_v33, %v50_v4 }
 0x1bf   :  { %v865_v34 = vpop.f32.mrb[10].mxu1 }
 0x1c0   :  { %v867_v35 = vpop.f32.mrb[11].mxu1  ;;  %v2230_v17 = vadd.f32 %v865_v34, %v55_v11  ;;  %v70_v34 = vpop.permute.xlu1 %69 }
 0x1c1   :  { %v2232_v18 = vadd.f32 %v867_v35, %v55_v11 }
 0x1d7   :  { %v3054_v36 = vpop.f32.mrb[12].mxu1 }
 0x1d8   :  { %v3056_v1 = vpop.f32.mrb[13].mxu1  ;;  %v2234_v25 = vadd.f32 %v3054_v36, %v60_v19 }
 0x1d9   :  { %v2236_v26 = vadd.f32 %v3056_v1, %v60_v19 }
 0x1db   :  { %v3058_v37 = vpop.f32.mrb[14].mxu1 }
 0x1dc   :  { %v3060_v38 = vpop.f32.mrb[15].mxu1  ;;  %v2238_v32 = vadd.f32 %v3058_v37, %v65_v27 }
 0x1dd   :  { %v2240_v33 = vadd.f32 %v3060_v38, %v65_v27 }
 0x1df   :  { %v3062_v39 = vpop.f32.mrb[16].mxu1 }
 0x1e0   :  { %v3064_v40 = vpop.f32.mrb[17].mxu1  ;;  %v2242_v46 = vadd.f32 %v3062_v39, %v70_v34 }
 0x1e1   :  { %v2244_v37 = vadd.f32 %v3064_v40, %v70_v34 }
 0x1e3   :  { %v3066_v41 = vpop.f32.mrb[18].mxu1 }
 0x1e4   :  { %v3068_v42 = vpop.f32.mrb[19].mxu1 }
 0x1e7   :  { %v3070_v44 = vpop.f32.mrb[20].mxu1 }
 0x1e8   :  { %v3072_v45 = vpop.f32.mrb[21].mxu1 }
 0x1eb   :  { %v1890_v48 = vpop.f32.mrb[0].mxu0 }
 0x1ec   :  { %v2211_v49 = vadd.f32 %v2210_v22, %v1890_v48  ;;  %v1892_v50 = vpop.f32.mrb[1].mxu0  ;;  %v75_v22 = vpop.permute.xlu0 %74 }
 0x1ed   :  { %v2213_v51 = vadd.f32 %v2212_v47, %v1892_v50  ;;  %v2246_v50 = vadd.f32 %v3066_v41, %v75_v22  ;;  %v2248_v39 = vadd.f32 %v3068_v42, %v75_v22 }
 0x1ee   :  { %1977 = vst [vmem:[%s3153_s3] sm:$0xff] %v2211_v49 }
 0x1ef   :  { %1978 = vst [vmem:[%s3153_s3 + $0x8] sm:$0xff] %v2213_v51  ;;  %v1896_v55 = vpop.f32.mrb[2].mxu0  ;;  %v80_v51 = vpop.permute.xlu1 %79 }
 0x1f0   :  { %v2215_v56 = vadd.f32 %v2214_v52, %v1896_v55  ;;  %v1898_v15 = vpop.f32.mrb[3].mxu0  ;;  %v2250_v55 = vadd.f32 %v3070_v44, %v80_v51  ;;  %v2252_v41 = vadd.f32 %v3072_v45, %v80_v51 }
 0x1f1   :  { %v2217_v57 = vadd.f32 %v2216_v53, %v1898_v15 }
 0x1f2   :  { %1979 = vst [vmem:[%s3153_s3 + $0x10] sm:$0xff] %v2215_v56 }
 0x1f3   :  { %1980 = vst [vmem:[%s3153_s3 + $0x18] sm:$0xff] %v2217_v57  ;;  %v1902_v61 = vpop.f32.mrb[4].mxu0 }
 0x1f4   :  { %v2219_v62 = vadd.f32 %v2218_v58, %v1902_v61  ;;  %v1904_v63 = vpop.f32.mrb[5].mxu0 }
 0x1f5   :  { %v2221_v0 = vadd.f32 %v2220_v59, %v1904_v63 }
 0x1f6   :  { %1981 = vst [vmem:[%s3153_s3 + $0x20] sm:$0xff] %v2219_v62 }
 0x1f7   :  { %1982 = vst [vmem:[%s3153_s3 + $0x28] sm:$0xff] %v2221_v0  ;;  %v1908_v5 = vpop.f32.mrb[6].mxu0 }
 0x1f8   :  { %v2223_v6 = vadd.f32 %v2222_v2, %v1908_v5  ;;  %v1910_v7 = vpop.f32.mrb[7].mxu0 }
 0x1f9   :  { %v2225_v8 = vadd.f32 %v2224_v3, %v1910_v7 }
 0x1fa   :  { %1983 = vst [vmem:[%s3153_s3 + $0x30] sm:$0xff] %v2223_v6 }
 0x1fb   :  { %1984 = vst [vmem:[%s3153_s3 + $0x38] sm:$0xff] %v2225_v8  ;;  %v1914_v12 = vpop.f32.mrb[8].mxu0 }
 0x1fc   :  { %v2227_v13 = vadd.f32 %v2226_v9, %v1914_v12  ;;  %v1916_v14 = vpop.f32.mrb[9].mxu0 }
 0x1fd   :  { %v2229_v16 = vadd.f32 %v2228_v10, %v1916_v14 }
 0x1fe   :  { %1985 = vst [vmem:[%s3153_s3 + $0x40] sm:$0xff] %v2227_v13 }
 0x1ff   :  { %1986 = vst [vmem:[%s3153_s3 + $0x48] sm:$0xff] %v2229_v16  ;;  %v1920_v20 = vpop.f32.mrb[10].mxu0 }
 0x200   :  { %v2231_v21 = vadd.f32 %v2230_v17, %v1920_v20  ;;  %v1922_v23 = vpop.f32.mrb[11].mxu0 }
 0x201   :  { %v2233_v24 = vadd.f32 %v2232_v18, %v1922_v23 }
 0x202   :  { %1987 = vst [vmem:[%s3153_s3 + $0x50] sm:$0xff] %v2231_v21 }
 0x203   :  { %1988 = vst [vmem:[%s3153_s3 + $0x58] sm:$0xff] %v2233_v24  ;;  %v1926_v28 = vpop.f32.mrb[12].mxu0 }
 0x204   :  { %v2235_v29 = vadd.f32 %v2234_v25, %v1926_v28  ;;  %v1928_v30 = vpop.f32.mrb[13].mxu0 }
 0x205   :  { %v2237_v31 = vadd.f32 %v2236_v26, %v1928_v30 }
 0x206   :  { %1989 = vst [vmem:[%s3153_s3 + $0x60] sm:$0xff] %v2235_v29 }
 0x207   :  { %1990 = vst [vmem:[%s3153_s3 + $0x68] sm:$0xff] %v2237_v31  ;;  %v1932_v35 = vpop.f32.mrb[14].mxu0 }
 0x208   :  { %v2239_v36 = vadd.f32 %v2238_v32, %v1932_v35  ;;  %v1934_v1 = vpop.f32.mrb[15].mxu0 }
 0x209   :  { %v2241_v43 = vadd.f32 %v2240_v33, %v1934_v1 }
 0x20a   :  { %1991 = vst [vmem:[%s3153_s3 + $0x70] sm:$0xff] %v2239_v36 }
 0x20b   :  { %1992 = vst [vmem:[%s3153_s3 + $0x78] sm:$0xff] %v2241_v43  ;;  %v1938_v38 = vpop.f32.mrb[16].mxu0 }
 0x20c   :  { %v2243_v47 = vadd.f32 %v2242_v46, %v1938_v38  ;;  %v1940_v48 = vpop.f32.mrb[17].mxu0 }
 0x20d   :  { %v2245_v49 = vadd.f32 %v2244_v37, %v1940_v48 }
 0x20e   :  { %1993 = vst [vmem:[%s3153_s3 + $0x80] sm:$0xff] %v2243_v47 }
 0x20f   :  { %1994 = vst [vmem:[%s3153_s3 + $0x88] sm:$0xff] %v2245_v49  ;;  %v1944_v40 = vpop.f32.mrb[18].mxu0 }
 0x210   :  { %v2247_v52 = vadd.f32 %v2246_v50, %v1944_v40  ;;  %v1946_v53 = vpop.f32.mrb[19].mxu0 }
 0x211   :  { %v2249_v54 = vadd.f32 %v2248_v39, %v1946_v53 }
 0x212   :  { %1995 = vst [vmem:[%s3153_s3 + $0x90] sm:$0xff] %v2247_v52 }
 0x213   :  { %1996 = vst [vmem:[%s3153_s3 + $0x98] sm:$0xff] %v2249_v54  ;;  %v1950_v42 = vpop.f32.mrb[20].mxu0 }
 0x214   :  { %v2251_v56 = vadd.f32 %v2250_v55, %v1950_v42  ;;  %v1952_v15 = vpop.f32.mrb[21].mxu0 }
 0x215   :  { %v2253_v57 = vadd.f32 %v2252_v41, %v1952_v15 }
 0x216   :  { %1997 = vst [vmem:[%s3153_s3 + $0xa0] sm:$0xf] %v2251_v56 }
 0x217   :  { %1998 = vst [vmem:[%s3153_s3 + $0xa8] sm:$0xf] %v2253_v57 }

</bundles_post_ra>
